<compile_context>
chip_gen: v7x
topology: tpu7x:2x2x1
jax: 0.10.0
libtpu: 0.0.40
codegen_flags: <defaults>
</compile_context>

<pallas_src>
import jax
import jax.numpy as jnp
from jax.experimental import pallas as pl
from jax.experimental.pallas import tpu as pltpu

LANE = 128
ACC_ROWS = 64                 # accumulator sublane height (64 -> 8 f32 vregs)


def _round_up(a, m):
    return ((a + m - 1) // m) * m


def _sublane_multiple(dtype):
    # Min second-to-last tile dim: 8 for 4-byte, 16 for 2-byte, 32 for 1-byte.
    return {4: 8, 2: 16, 1: 32}.get(jnp.dtype(dtype).itemsize, 8)


def _detect_num_tensorcores():
    """Best-effort TensorCores per device: v5e/v6e -> 1, v7x -> 2."""
    try:
        kind = jax.devices()[0].device_kind.lower()
    except Exception:
        return 1
    if "v7" in kind or "tpu7" in kind or "7x" in kind:
        return 2
    return 1


def _make_kernel(rows, block_rows, acc_rows, blocks_per_core, blocks_total,
                 num_cores):
    full_blocks = rows // block_rows              # blocks with no ragged rows
    n_slabs = block_rows // acc_rows
    clean = (rows % block_rows == 0) and (
        blocks_total == num_cores * blocks_per_core)

    def kernel(x_ref, y_ref, osq_ref, oab_ref, acc_sq, acc_ab):
        c = pl.program_id(0)                      # core-split index
        i = pl.program_id(1)                      # block index within core

        @pl.when(i == 0)
        def _init():
            acc_sq[...] = jnp.zeros_like(acc_sq)
            acc_ab[...] = jnp.zeros_like(acc_ab)

        def accumulate(row0=None):
            # Stream the block in (acc_rows, LANE) slabs held in vregs and
            # reduce into small f32 partial sums; a single tiny RMW hits the
            # VMEM accumulators afterwards (no full-tile accumulator traffic).
            def body(s, carry):
                sq, ab = carry
                r = pl.multiple_of(s * acc_rows, acc_rows)
                xg = x_ref[pl.ds(r, acc_rows), :].astype(jnp.float32)
                yg = y_ref[pl.ds(r, acc_rows), :].astype(jnp.float32)
                dg = xg - yg
                if row0 is not None:
                    rid = row0 + r + jax.lax.broadcasted_iota(
                        jnp.int32, dg.shape, 0)
                    # True select: padded/garbage rows are never combined
                    # arithmetically (do NOT convert to multiply-by-mask).
                    dg = jnp.where(rid < rows, dg, 0.0)
                return sq + dg * dg, ab + jnp.abs(dg)

            zero = jnp.zeros((acc_rows, LANE), jnp.float32)
            sq, ab = jax.lax.fori_loop(0, n_slabs, body, (zero, zero))
            acc_sq[...] += sq
            acc_ab[...] += ab

        if clean:
            # Every (core, step) maps to a fully-valid block: no mask code.
            accumulate()
        else:
            gb = c * blocks_per_core + i          # unclamped global block idx

            @pl.when(gb < full_blocks)
            def _full():
                accumulate()

            @pl.when((gb >= full_blocks) & (gb < blocks_total))
            def _ragged():
                # Single genuinely-ragged block: mask rows past `rows`.
                accumulate(row0=gb * block_rows)

            # gb >= blocks_total: phantom block from the core split -> skip
            # all work (its DMA was clamped in-bounds by the index_map).

        @pl.when(i == pl.num_programs(1) - 1)
        def _finalize():
            osq_ref[0] = acc_sq[...]
            oab_ref[0] = acc_ab[...]

    return kernel


def l1l2_loss(X, Y, *, target_step_bytes=None):
    """mean((X-Y)^2) + mean(|X-Y|) over all elements (scalar, f32)."""
    assert X.shape == Y.shape, (X.shape, Y.shape)
    n = X.size
    xf = X.reshape(-1)            # native dtype: no wrapper-side upcast / copy
    yf = Y.reshape(-1)

    sub = _sublane_multiple(X.dtype)
    rows = n // LANE
    n_main = rows * LANE

    # Tiny inputs: plain JAX (can't even form a minimal tile).
    if rows < sub:
        d = xf.astype(jnp.float32) - yf.astype(jnp.float32)
        return jnp.mean(d * d) + jnp.mean(jnp.abs(d))

    num_cores = _detect_num_tensorcores()

    # Free (bitcast) reshape when n % 128 == 0 (the common case).
    # TODO(synk): when n % 128 != 0 this slice makes XLA materialize a copy of
    # both inputs feeding the kernel; avoid via allow_input_fusion or an
    # in-kernel lane-tail mask if that shape class matters.
    x2 = xf[:n_main].reshape(rows, LANE)
    y2 = yf[:n_main].reshape(rows, LANE)

    itemsize = jnp.dtype(X.dtype).itemsize
    if target_step_bytes is None:
        # >= ~1 MiB of each input per grid step (2 MiB when two TCs share
        # HBM), regardless of dtype, so per-step overhead stays negligible.
        target_step_bytes = (2 << 20) if num_cores > 1 else (1 << 20)

    # Accumulator height: 64 rows (8 independent f32 vreg add chains), shrunk
    # for small inputs but never below the dtype's minimum sublane tile.
    acc_rows = min(ACC_ROWS, (rows // sub) * sub)
    target_rows = max(acc_rows, target_step_bytes // (LANE * itemsize))
    block_rows = min(_round_up(target_rows, acc_rows),
                     _round_up(pl.cdiv(rows, num_cores), acc_rows))
    blocks_total = pl.cdiv(rows, block_rows)
    blocks_per_core = pl.cdiv(blocks_total, num_cores)

    if num_cores * blocks_per_core == blocks_total:
        in_index = lambda c, i: (c * blocks_per_core + i, 0)
    else:
        # Phantom trailing blocks: clamp their DMA in-bounds; kernel skips them.
        last = blocks_total - 1
        in_index = lambda c, i: (jnp.minimum(c * blocks_per_core + i, last), 0)

    if num_cores > 1 and hasattr(pltpu, "CORE_PARALLEL"):
        dim_sem = (pltpu.CORE_PARALLEL, pltpu.ARBITRARY)   # shard across TCs
    elif num_cores > 1:
        dim_sem = ("parallel", "arbitrary")
    else:
        dim_sem = ("arbitrary", "arbitrary")

    # VMEM: 2 inputs x 2 pipeline buffers + 2 small f32 accumulators.
    vmem_bytes = (2 * 2 * block_rows * LANE * itemsize
                  + 2 * acc_rows * LANE * 4)
    cp_kwargs = dict(dimension_semantics=dim_sem)
    if vmem_bytes > 12 * 1024 * 1024:
        # Cap well under v7x's 64 MiB physical VMEM.
        cp_kwargs["vmem_limit_bytes"] = min(int(vmem_bytes * 1.5), 48 << 20)

    kernel = _make_kernel(rows, block_rows, acc_rows, blocks_per_core,
                          blocks_total, num_cores)

    p_sq, p_ab = pl.pallas_call(
        kernel,
        out_shape=(
            jax.ShapeDtypeStruct((num_cores, acc_rows, LANE), jnp.float32),
            jax.ShapeDtypeStruct((num_cores, acc_rows, LANE), jnp.float32),
        ),
        grid_spec=pltpu.PrefetchScalarGridSpec(
            num_scalar_prefetch=0,
            grid=(num_cores, blocks_per_core),
            in_specs=[
                pl.BlockSpec((block_rows, LANE), in_index),
                pl.BlockSpec((block_rows, LANE), in_index),
            ],
            out_specs=[
                pl.BlockSpec((1, acc_rows, LANE), lambda c, i: (c, 0, 0)),
                pl.BlockSpec((1, acc_rows, LANE), lambda c, i: (c, 0, 0)),
            ],
            scratch_shapes=[
                pltpu.VMEM((acc_rows, LANE), jnp.float32),
                pltpu.VMEM((acc_rows, LANE), jnp.float32),
            ],
        ),
        compiler_params=pltpu.CompilerParams(**cp_kwargs),
    )(x2, y2)

    sum_sq = p_sq.sum()
    sum_ab = p_ab.sum()

    # Ragged lane tail (< 128 elements): add its contribution in plain JAX.
    if n_main < n:
        dt = xf[n_main:].astype(jnp.float32) - yf[n_main:].astype(jnp.float32)
        sum_sq = sum_sq + jnp.sum(dt * dt)
        sum_ab = sum_ab + jnp.sum(jnp.abs(dt))

    return (sum_sq + sum_ab) / n


if __name__ == "__main__":
    key = jax.random.PRNGKey(0)
    kx, ky = jax.random.split(key)

    def ref_loss(X, Y):
        d = X.astype(jnp.float32) - Y.astype(jnp.float32)
        return jnp.mean(d * d) + jnp.mean(jnp.abs(d))

    loss_fn = jax.jit(l1l2_loss)

    # Primary case (NCHW-style inputs consistent with the loss module).
    X = jax.random.normal(kx, (2, 4, 16, 16), dtype=jnp.float32)
    Y = jax.random.normal(ky, (2, 4, 16, 16), dtype=jnp.float32)
    out = jax.block_until_ready(loss_fn(X, Y))
    assert jnp.allclose(out, ref_loss(X, Y), rtol=1e-5, atol=1e-6), \
        (out, ref_loss(X, Y))

    # Multi-block case: exercises the streamed slab accumulation + multi-step grid.
    X2 = jax.random.normal(kx, (8, 8, 64, 128), dtype=jnp.float32)
    Y2 = jax.random.normal(ky, (8, 8, 64, 128), dtype=jnp.float32)
    out2 = jax.block_until_ready(loss_fn(X2, Y2))
    assert jnp.allclose(out2, ref_loss(X2, Y2), rtol=1e-5, atol=1e-6), \
        (out2, ref_loss(X2, Y2))

    # Ragged case: n not a multiple of 128 -> masked last block + JAX lane tail.
    X3 = jax.random.normal(kx, (3, 5, 7, 11), dtype=jnp.float32)
    Y3 = jax.random.normal(ky, (3, 5, 7, 11), dtype=jnp.float32)
    out3 = jax.block_until_ready(loss_fn(X3, Y3))
    assert jnp.allclose(out3, ref_loss(X3, Y3), rtol=1e-5, atol=1e-6), \
        (out3, ref_loss(X3, Y3))

    print("KERNEL_OK")
</pallas_src>

<mosaic_0001>
module attributes {stable_mosaic.version = 11 : i64} {
  func.func @kernel(%arg0: i32, %arg1: i32, %arg2: memref<16x128xf32, #tpu.memory_space<vmem>>, %arg3: memref<16x128xf32, #tpu.memory_space<vmem>>, %arg4: memref<1x16x128xf32, #tpu.memory_space<vmem>>, %arg5: memref<1x16x128xf32, #tpu.memory_space<vmem>>, %arg6: memref<16x128xf32, #tpu.memory_space<vmem>>, %arg7: memref<16x128xf32, #tpu.memory_space<vmem>>) attributes {dimension_semantics = [#tpu.dimension_semantics<arbitrary>, #tpu.dimension_semantics<arbitrary>], iteration_bounds = array<i64: 1, 1>, scalar_prefetch = 0 : i64, scratch_operands = 2 : i64, tpu.core_type = #tpu.core_type<tc>, window_params = [{transform_indices = @transform_0, window_bounds = array<i64: 16, 128>}, {transform_indices = @transform_1, window_bounds = array<i64: 16, 128>}, {transform_indices = @transform_2, window_bounds = array<i64: 1, 16, 128>}, {transform_indices = @transform_3, window_bounds = array<i64: 1, 16, 128>}]} {
    %c0_i32 = arith.constant 0 : i32
    %0 = arith.cmpi eq, %arg1, %c0_i32 : i32
    %1 = arith.extui %0 : i1 to i32
    %c0_i32_0 = arith.constant 0 : i32
    %2 = arith.cmpi ne, %1, %c0_i32_0 : i32
    scf.if %2 {
      %cst_13 = arith.constant 0.000000e+00 : f32
      %24 = vector.broadcast %cst_13 : f32 to vector<16x128xf32>
      %c0_14 = arith.constant 0 : index
      %c0_15 = arith.constant 0 : index
      %25 = vector.load %arg6[%c0_14, %c0_15] : memref<16x128xf32, #tpu.memory_space<vmem>>, vector<16x128xf32>
      tpu.vector_store %arg6[%c0_14, %c0_15], %24 {strides = array<i32>} : memref<16x128xf32, #tpu.memory_space<vmem>>, vector<16x128xf32>,
      %cst_16 = arith.constant 0.000000e+00 : f32
      %26 = vector.broadcast %cst_16 : f32 to vector<16x128xf32>
      %c0_17 = arith.constant 0 : index
      %c0_18 = arith.constant 0 : index
      %27 = vector.load %arg7[%c0_17, %c0_18] : memref<16x128xf32, #tpu.memory_space<vmem>>, vector<16x128xf32>
      tpu.vector_store %arg7[%c0_17, %c0_18], %26 {strides = array<i32>} : memref<16x128xf32, #tpu.memory_space<vmem>>, vector<16x128xf32>,
    } else {
    }
    %cst = arith.constant 0.000000e+00 : f32
    %3 = vector.broadcast %cst : f32 to vector<16x128xf32>
    %c0_i32_1 = arith.constant 0 : i32
    %c16_i32 = arith.constant 16 : i32
    %4 = arith.muli %c0_i32_1, %c16_i32 : i32
    %5 = tpu.assume_multiple %4, 16 : i32
    %6 = arith.index_cast %5 : i32 to index
    %c0 = arith.constant 0 : index
    %7 = vector.load %arg2[%6, %c0] : memref<16x128xf32, #tpu.memory_space<vmem>>, vector<16x128xf32>
    %8 = arith.index_cast %5 : i32 to index
    %c0_2 = arith.constant 0 : index
    %9 = vector.load %arg3[%8, %c0_2] : memref<16x128xf32, #tpu.memory_space<vmem>>, vector<16x128xf32>
    %10 = arith.subf %7, %9 : vector<16x128xf32>
    %11 = arith.mulf %10, %10 : vector<16x128xf32>
    %12 = arith.addf %3, %11 : vector<16x128xf32>
    %13 = math.absf %10 : vector<16x128xf32>
    %14 = arith.addf %3, %13 : vector<16x128xf32>
    %c1_i32 = arith.constant 1 : i32
    %c0_3 = arith.constant 0 : index
    %c0_4 = arith.constant 0 : index
    %15 = vector.load %arg6[%c0_3, %c0_4] : memref<16x128xf32, #tpu.memory_space<vmem>>, vector<16x128xf32>
    %16 = arith.addf %15, %12 : vector<16x128xf32>
    %c0_5 = arith.constant 0 : index
    %c0_6 = arith.constant 0 : index
    %17 = vector.load %arg6[%c0_5, %c0_6] : memref<16x128xf32, #tpu.memory_space<vmem>>, vector<16x128xf32>
    tpu.vector_store %arg6[%c0_5, %c0_6], %16 {strides = array<i32>} : memref<16x128xf32, #tpu.memory_space<vmem>>, vector<16x128xf32>,
    %c0_7 = arith.constant 0 : index
    %c0_8 = arith.constant 0 : index
    %18 = vector.load %arg7[%c0_7, %c0_8] : memref<16x128xf32, #tpu.memory_space<vmem>>, vector<16x128xf32>
    %19 = arith.addf %18, %14 : vector<16x128xf32>
    %c0_9 = arith.constant 0 : index
    %c0_10 = arith.constant 0 : index
    %20 = vector.load %arg7[%c0_9, %c0_10] : memref<16x128xf32, #tpu.memory_space<vmem>>, vector<16x128xf32>
    tpu.vector_store %arg7[%c0_9, %c0_10], %19 {strides = array<i32>} : memref<16x128xf32, #tpu.memory_space<vmem>>, vector<16x128xf32>,
    %c0_i32_11 = arith.constant 0 : i32
    %21 = arith.cmpi eq, %arg1, %c0_i32_11 : i32
    %22 = arith.extui %21 : i1 to i32
    %c0_i32_12 = arith.constant 0 : i32
    %23 = arith.cmpi ne, %22, %c0_i32_12 : i32
    scf.if %23 {
      %c0_13 = arith.constant 0 : index
      %c0_14 = arith.constant 0 : index
      %24 = vector.load %arg6[%c0_13, %c0_14] : memref<16x128xf32, #tpu.memory_space<vmem>>, vector<16x128xf32>
      %c0_15 = arith.constant 0 : index
      %c0_16 = arith.constant 0 : index
      %c0_17 = arith.constant 0 : index
      %25 = vector.load %arg4[%c0_15, %c0_16, %c0_17] : memref<1x16x128xf32, #tpu.memory_space<vmem>>, vector<1x16x128xf32>
      %26 = vector.shape_cast %25 : vector<1x16x128xf32> to vector<16x128xf32>
      %27 = vector.shape_cast %24 : vector<16x128xf32> to vector<1x16x128xf32>
      tpu.vector_store %arg4[%c0_15, %c0_16, %c0_17], %27 {strides = array<i32>} : memref<1x16x128xf32, #tpu.memory_space<vmem>>, vector<1x16x128xf32>,
      %c0_18 = arith.constant 0 : index
      %c0_19 = arith.constant 0 : index
      %28 = vector.load %arg7[%c0_18, %c0_19] : memref<16x128xf32, #tpu.memory_space<vmem>>, vector<16x128xf32>
      %c0_20 = arith.constant 0 : index
      %c0_21 = arith.constant 0 : index
      %c0_22 = arith.constant 0 : index
      %29 = vector.load %arg5[%c0_20, %c0_21, %c0_22] : memref<1x16x128xf32, #tpu.memory_space<vmem>>, vector<1x16x128xf32>
      %30 = vector.shape_cast %29 : vector<1x16x128xf32> to vector<16x128xf32>
      %31 = vector.shape_cast %28 : vector<16x128xf32> to vector<1x16x128xf32>
      tpu.vector_store %arg5[%c0_20, %c0_21, %c0_22], %31 {strides = array<i32>} : memref<1x16x128xf32, #tpu.memory_space<vmem>>, vector<1x16x128xf32>,
    } else {
    }
    return
  }
  func.func @transform_0(%arg0: i32, %arg1: i32) -> (i32, i32) {
    %c1_i32 = arith.constant 1 : i32
    %0 = arith.muli %arg0, %c1_i32 : i32
    %1 = arith.addi %0, %arg1 : i32
    %c0_i32 = arith.constant 0 : i32
    %c0_i32_0 = arith.constant 0 : i32
    return %1, %c0_i32 : i32, i32
  }
  func.func @transform_1(%arg0: i32, %arg1: i32) -> (i32, i32) {
    %c1_i32 = arith.constant 1 : i32
    %0 = arith.muli %arg0, %c1_i32 : i32
    %1 = arith.addi %0, %arg1 : i32
    %c0_i32 = arith.constant 0 : i32
    %c0_i32_0 = arith.constant 0 : i32
    return %1, %c0_i32 : i32, i32
  }
  func.func @transform_2(%arg0: i32, %arg1: i32) -> (i32, i32, i32) {
    %c0_i32 = arith.constant 0 : i32
    %c0_i32_0 = arith.constant 0 : i32
    %c0_i32_1 = arith.constant 0 : i32
    return %arg0, %c0_i32, %c0_i32_0 : i32, i32, i32
  }
  func.func @transform_3(%arg0: i32, %arg1: i32) -> (i32, i32, i32) {
    %c0_i32 = arith.constant 0 : i32
    %c0_i32_0 = arith.constant 0 : i32
    %c0_i32_1 = arith.constant 0 : i32
    return %arg0, %c0_i32, %c0_i32_0 : i32, i32, i32
  }
}

</mosaic_0001>

<bundles_post_ra>
// kernel: l1l2_loss.1
= control target key start
LH: loop header
LB: loop body
LE: loop exit
PB: predicated region body
PF: predicated region fallthrough
CT: control target
= control target key end

     0   :  { %s166_s0 = inlined_call_operand.vmem [shape: f32[16,128], index: 0, kind: input, shape index: {}]   ;;  %s167_s1 = inlined_call_operand.vmem [shape: f32[16,128], index: 1, kind: input, shape index: {}]   ;;  %s168_s2 = inlined_call_operand.vmem [shape: f32[1,16,128], index: 2, kind: output, shape index: {0}]   ;;  %s169_s3 = inlined_call_operand.vmem [shape: f32[1,16,128], index: 3, kind: output, shape index: {1}]  }
   0x1   :  { %v65_v0 = vld [vmem:[%s166_s0] sm:$0xff]  ;;  %v66_v2 = vld [vmem:[%s166_s0 + $0x8] sm:$0xff] }
   0x2   :  { %v67_v1 = vld [vmem:[%s167_s1] sm:$0xff]  ;;  %v68_v4 = vld [vmem:[%s167_s1 + $0x8] sm:$0xff] }
   0x3   :  { %v69_v3 = vsub.f32 %v65_v0, %v67_v1  ;;  %v70_v5 = vsub.f32 %v66_v2, %v68_v4 }
   0x5   :  { %v71_v6 = vmul.f32 %v69_v3, %v69_v3  ;;  %v75_v7 = vand.u32 2147483647, %v69_v3  ;;  %v72_v8 = vmul.f32 %v70_v5, %v70_v5  ;;  %v76_v9 = vand.u32 2147483647, %v70_v5 }
   0x7   :  { %96 = vst [vmem:[%s168_s2] sm:$0xff] %v71_v6  ;;  %100 = vst [vmem:[%s169_s3] sm:$0xff] %v75_v7 }
   0x8   :  { %97 = vst [vmem:[%s168_s2 + $0x8] sm:$0xff] %v72_v8  ;;  %101 = vst [vmem:[%s169_s3 + $0x8] sm:$0xff] %v76_v9 }

</bundles_post_ra>
